<compile_context>
chip_gen: v6e
topology: v6e:2x2x1
jax: 0.10.0
libtpu: 0.0.40
codegen_flags: <defaults>
</compile_context>

<pallas_src>
import math

import jax
import jax.numpy as jnp
from jax.experimental import pallas as pl
from jax.experimental.pallas import tpu as pltpu


def _round_up(n, m):
    return ((n + m - 1) // m) * m


def _pick_tile_l(L, tile_l, target=1024):
    """Sequence tile: multiple of 16, preferring a divisor of L (no row padding)."""
    if tile_l is not None:
        return max(16, min(_round_up(tile_l, 16), _round_up(L, 16)))
    best = None
    t = 16
    while t <= min(target, L):
        if L % t == 0:
            best = t
        t += 16
    if best is not None:
        return best
    return min(_round_up(target, 16), _round_up(L, 16))


def _pick_tile_b(B, TL, target_rows=2048):
    """Batch tile: largest divisor of B such that Bt*TL stays near target_rows."""
    cap = max(1, target_rows // TL)
    bt = 1
    for d in range(1, B + 1):
        if B % d == 0 and d <= cap:
            bt = d
    return bt


# ----------------------------------- kernel ------------------------------------------------

def _embed_kernel(x_ref, w_ref, p_ref, o_ref):
    # x_ref: (Bt, TL, K3)  bf16  im2col input tile (circular wrap folded in wrapper)
    # w_ref: (K3, D)       bf16  folded weight  W' = Wc_flat @ Wp^T
    # p_ref: (TL, D)       bf16  folded positional term  P' = pe @ Wp^T + bias
    # o_ref: (Bt, TL, D)         output tile
    x = x_ref[...].astype(jnp.float32)
    w = w_ref[...].astype(jnp.float32)
    # start from the positional/bias term broadcast over the batch-tile dim
    acc = jnp.broadcast_to(p_ref[...].astype(jnp.float32)[None, :, :], o_ref.shape)
    # K=3 contraction as VPU broadcast-FMAs (contraction dim is tiny; keep MXU idle)
    for k in range(x.shape[-1]):
        acc = acc + x[:, :, k:k + 1] * w[k:k + 1, :][None, :, :]
    o_ref[...] = acc.astype(o_ref.dtype)


# ------------------------------ one-time parameter prep -----------------------------------

def prepare_e_com_00_pe_params(conv_weight, pe_table, proj_weight, proj_bias,
                               *, param_dtype=jnp.bfloat16):
    """Hoisted static prep (call once, reuse across forwards).

    conv_weight: (d_model, c_in, 3)   PyTorch Conv1d layout
    pe_table:    (max_len, d_model)
    proj_weight: (d_model, d_model)   PyTorch Linear layout (out, in)
    proj_bias:   (d_model,)
    Returns dict with folded bf16 operands:
      w_fold: (3*c_in, d_model)   = Wc_flat @ Wp^T
      p_fold: (max_len, d_model)  = pe @ Wp^T + bias
    """
    d_model, c_in, k = conv_weight.shape
    assert k == 3
    wc = jnp.transpose(conv_weight, (2, 1, 0)).reshape(3 * c_in, d_model)  # tap-major
    wp = jnp.transpose(proj_weight, (1, 0))                                # (d_in, d_out)
    w_fold = jnp.dot(wc.astype(jnp.float32), wp.astype(jnp.float32))
    p_fold = jnp.dot(pe_table.astype(jnp.float32), wp.astype(jnp.float32)) \
        + proj_bias.astype(jnp.float32)[None, :]
    return {
        "w_fold": w_fold.astype(param_dtype),
        "p_fold": p_fold.astype(param_dtype),
        "c_in": c_in,
        "d_model": d_model,
    }


# ----------------------------------- forward ------------------------------------------------

def e_com_00_pe_forward(x, params, *, tile_l=None, out_dtype=jnp.bfloat16):
    """E_com_00_PE.forward (embed_type='data', eval mode).  x: (B, L, C)."""
    xv = x[:, :, 0:1]                      # module keeps only channel 0
    B, L, c_in = xv.shape
    w_fold = params["w_fold"]
    p_fold = params["p_fold"]
    K3, D = w_fold.shape
    assert K3 == 3 * c_in
    assert L <= p_fold.shape[0], "sequence length exceeds positional-embedding max_len"

    # im2col with the circular wrap folded into the gather (no (B, L+2, C) HBM copy)
    # column layout is tap-major: [x[l-1](ch...), x[l](ch...), x[l+1](ch...)]
    x3 = jnp.concatenate(
        [jnp.roll(xv, 1, axis=1), xv, jnp.roll(xv, -1, axis=1)], axis=-1
    ).astype(jnp.bfloat16)                 # (B, L, 3*c_in)

    TL = _pick_tile_l(L, tile_l)
    Lp = _round_up(L, TL)
    if Lp != L:
        x3 = jnp.pad(x3, ((0, 0), (0, Lp - L), (0, 0)))
    pf = p_fold
    if Lp > pf.shape[0]:
        pf = jnp.pad(pf, ((0, Lp - pf.shape[0]), (0, 0)))

    Bt = _pick_tile_b(B, TL)
    grid = (Lp // TL, B // Bt)             # t outer, b inner -> P' tile resident across b

    out = pl.pallas_call(
        _embed_kernel,
        out_shape=jax.ShapeDtypeStruct((B, Lp, D), out_dtype),
        grid_spec=pltpu.PrefetchScalarGridSpec(
            num_scalar_prefetch=0,
            grid=grid,
            in_specs=[
                pl.BlockSpec((Bt, TL, K3), lambda t, b: (b, t, 0)),   # im2col tile
                pl.BlockSpec((K3, D), lambda t, b: (0, 0)),           # folded weight (resident)
                pl.BlockSpec((TL, D), lambda t, b: (t, 0)),           # folded pe (resident over b)
            ],
            out_specs=pl.BlockSpec((Bt, TL, D), lambda t, b: (b, t, 0)),
        ),
        compiler_params=pltpu.CompilerParams(
            dimension_semantics=("parallel", "parallel"),
            vmem_limit_bytes=32 * 1024 * 1024,
        ),
    )(x3, w_fold, pf)

    if Lp != L:
        out = out[:, :L, :]
    return out


# ------------------------- parameter construction (PyTorch-equivalent inits) ---------------

def make_positional_embedding(d_model, max_len=5000):
    position = jnp.arange(0, max_len, dtype=jnp.float32)[:, None]
    div_term = jnp.exp(jnp.arange(0, d_model, 2, dtype=jnp.float32)
                       * -(math.log(10000.0) / d_model))
    pe = jnp.zeros((max_len, d_model), jnp.float32)
    pe = pe.at[:, 0::2].set(jnp.sin(position * div_term))
    pe = pe.at[:, 1::2].set(jnp.cos(position * div_term))
    return pe


def make_conv_weight(key, c_in, d_model):
    # kaiming_normal_(mode='fan_in', nonlinearity='leaky_relu'): fan_in = c_in*3
    fan_in = c_in * 3
    gain = math.sqrt(2.0 / (1.0 + 0.01 ** 2))
    std = gain / math.sqrt(fan_in)
    return std * jax.random.normal(key, (d_model, c_in, 3), dtype=jnp.float32)


def make_linear_params(key, d_in, d_out):
    # PyTorch nn.Linear default init: U(-1/sqrt(d_in), 1/sqrt(d_in)) for W and b
    kw, kb = jax.random.split(key)
    bound = 1.0 / math.sqrt(d_in)
    w = jax.random.uniform(kw, (d_out, d_in), minval=-bound, maxval=bound, dtype=jnp.float32)
    b = jax.random.uniform(kb, (d_out,), minval=-bound, maxval=bound, dtype=jnp.float32)
    return w, b


# ------------------------- pure-JAX reference ---------------------------------------------

def _reference(x, conv_weight, pe_table, proj_weight, proj_bias):
    B, L, _ = x.shape
    xv = x[:, :, 0:1]
    # circular conv1d (k=3, padding=1, circular, no bias) in (B, L, C) layout
    xp = jnp.concatenate([xv[:, -1:, :], xv, xv[:, :1, :]], axis=1)
    w = jnp.transpose(conv_weight, (2, 1, 0))  # (3, c_in, d_model)
    e = sum(jnp.einsum('blc,cd->bld', xp[:, k:k + L, :], w[k]) for k in range(3))
    e = e + pe_table[None, :L, :]
    y = jnp.einsum('bld,ed->ble', e, proj_weight) + proj_bias
    return y  # dropout = identity (eval)


if __name__ == "__main__":
    B, L, C = 2, 32, 4
    c_in, d_model = 1, 32   # forward slices x[:, :, 0:1] -> effective c_in = 1

    key = jax.random.PRNGKey(0)
    kx, kw, kp = jax.random.split(key, 3)

    x = jax.random.normal(kx, (B, L, C), dtype=jnp.float32)
    conv_weight = make_conv_weight(kw, c_in, d_model)
    pe_table = make_positional_embedding(d_model, max_len=5000)
    proj_weight, proj_bias = make_linear_params(kp, d_model, d_model)

    params = prepare_e_com_00_pe_params(conv_weight, pe_table, proj_weight, proj_bias)

    ref = _reference(x, conv_weight, pe_table, proj_weight, proj_bias)

    # small explicit tile -> grid (2, 1): exercises multi-step pipeline + resident P' tile
    out = e_com_00_pe_forward(x, params, tile_l=16)
    out = jax.block_until_ready(out)
    assert out.shape == (B, L, d_model)
    assert jnp.allclose(out.astype(jnp.float32), ref, atol=5e-2, rtol=5e-2), \
        float(jnp.max(jnp.abs(out.astype(jnp.float32) - ref)))

    # default tiling path (TL chosen automatically to divide L)
    out2 = e_com_00_pe_forward(x, params)
    out2 = jax.block_until_ready(out2)
    assert out2.shape == (B, L, d_model)
    assert jnp.allclose(out2.astype(jnp.float32), ref, atol=5e-2, rtol=5e-2), \
        float(jnp.max(jnp.abs(out2.astype(jnp.float32) - ref)))

    print("KERNEL_OK")
</pallas_src>

<mosaic_0001>
module attributes {stable_mosaic.version = 11 : i64} {
  func.func @_embed_kernel(%arg0: i32, %arg1: i32, %arg2: memref<2x16x3xbf16, #tpu.memory_space<vmem>>, %arg3: memref<3x32xbf16, #tpu.memory_space<vmem>>, %arg4: memref<16x32xbf16, #tpu.memory_space<vmem>>, %arg5: memref<2x16x32xbf16, #tpu.memory_space<vmem>>) attributes {dimension_semantics = [#tpu.dimension_semantics<parallel>, #tpu.dimension_semantics<parallel>], iteration_bounds = array<i64: 2, 1>, scalar_prefetch = 0 : i64, scratch_operands = 0 : i64, tpu.core_type = #tpu.core_type<tc>, window_params = [{transform_indices = @transform_0, window_bounds = array<i64: 2, 16, 3>}, {pipeline_mode = #tpu.pipeline_mode<synchronous>, transform_indices = @transform_1, window_bounds = array<i64: 3, 32>}, {transform_indices = @transform_2, window_bounds = array<i64: 16, 32>}, {transform_indices = @transform_3, window_bounds = array<i64: 2, 16, 32>}]} {
    %c0 = arith.constant 0 : index
    %c0_0 = arith.constant 0 : index
    %c0_1 = arith.constant 0 : index
    %0 = vector.load %arg2[%c0, %c0_0, %c0_1] : memref<2x16x3xbf16, #tpu.memory_space<vmem>>, vector<2x16x3xbf16>
    %1 = arith.extf %0 : vector<2x16x3xbf16> to vector<2x16x3xf32>
    %c0_2 = arith.constant 0 : index
    %c0_3 = arith.constant 0 : index
    %2 = vector.load %arg3[%c0_2, %c0_3] : memref<3x32xbf16, #tpu.memory_space<vmem>>, vector<3x32xbf16>
    %3 = arith.extf %2 : vector<3x32xbf16> to vector<3x32xf32>
    %c0_4 = arith.constant 0 : index
    %c0_5 = arith.constant 0 : index
    %4 = vector.load %arg4[%c0_4, %c0_5] : memref<16x32xbf16, #tpu.memory_space<vmem>>, vector<16x32xbf16>
    %5 = arith.extf %4 : vector<16x32xbf16> to vector<16x32xf32>
    %6 = vector.shape_cast %5 : vector<16x32xf32> to vector<1x16x32xf32>
    %7 = vector.shape_cast %6 : vector<1x16x32xf32> to vector<1x16x32xf32>
    %8 = vector.broadcast %7 : vector<1x16x32xf32> to vector<2x16x32xf32>
    %9 = vector.extract_strided_slice %1 {offsets = [0, 0, 0], sizes = [2, 16, 1], strides = [1, 1, 1]} : vector<2x16x3xf32> to vector<2x16x1xf32>
    %10 = vector.extract_strided_slice %3 {offsets = [0, 0], sizes = [1, 32], strides = [1, 1]} : vector<3x32xf32> to vector<1x32xf32>
    %11 = vector.shape_cast %10 : vector<1x32xf32> to vector<1x1x32xf32>
    %12 = vector.broadcast %9 : vector<2x16x1xf32> to vector<2x16x32xf32>
    %13 = vector.broadcast %11 : vector<1x1x32xf32> to vector<2x16x32xf32>
    %14 = arith.mulf %12, %13 : vector<2x16x32xf32>
    %15 = arith.addf %8, %14 : vector<2x16x32xf32>
    %16 = vector.extract_strided_slice %1 {offsets = [0, 0, 1], sizes = [2, 16, 1], strides = [1, 1, 1]} : vector<2x16x3xf32> to vector<2x16x1xf32>
    %17 = vector.extract_strided_slice %3 {offsets = [1, 0], sizes = [1, 32], strides = [1, 1]} : vector<3x32xf32> to vector<1x32xf32>
    %18 = vector.shape_cast %17 : vector<1x32xf32> to vector<1x1x32xf32>
    %19 = vector.broadcast %16 : vector<2x16x1xf32> to vector<2x16x32xf32>
    %20 = vector.broadcast %18 : vector<1x1x32xf32> to vector<2x16x32xf32>
    %21 = arith.mulf %19, %20 : vector<2x16x32xf32>
    %22 = arith.addf %15, %21 : vector<2x16x32xf32>
    %23 = vector.extract_strided_slice %1 {offsets = [0, 0, 2], sizes = [2, 16, 1], strides = [1, 1, 1]} : vector<2x16x3xf32> to vector<2x16x1xf32>
    %24 = vector.extract_strided_slice %3 {offsets = [2, 0], sizes = [1, 32], strides = [1, 1]} : vector<3x32xf32> to vector<1x32xf32>
    %25 = vector.shape_cast %24 : vector<1x32xf32> to vector<1x1x32xf32>
    %26 = vector.broadcast %23 : vector<2x16x1xf32> to vector<2x16x32xf32>
    %27 = vector.broadcast %25 : vector<1x1x32xf32> to vector<2x16x32xf32>
    %28 = arith.mulf %26, %27 : vector<2x16x32xf32>
    %29 = arith.addf %22, %28 : vector<2x16x32xf32>
    %30 = arith.truncf %29 : vector<2x16x32xf32> to vector<2x16x32xbf16>
    %c0_6 = arith.constant 0 : index
    %c0_7 = arith.constant 0 : index
    %c0_8 = arith.constant 0 : index
    %31 = vector.load %arg5[%c0_6, %c0_7, %c0_8] : memref<2x16x32xbf16, #tpu.memory_space<vmem>>, vector<2x16x32xbf16>
    tpu.vector_store %arg5[%c0_6, %c0_7, %c0_8], %30 {strides = array<i32>} : memref<2x16x32xbf16, #tpu.memory_space<vmem>>, vector<2x16x32xbf16>,
    return
  }
  func.func @transform_0(%arg0: i32, %arg1: i32) -> (i32, i32, i32) {
    %c0_i32 = arith.constant 0 : i32
    %c0_i32_0 = arith.constant 0 : i32
    return %arg1, %arg0, %c0_i32 : i32, i32, i32
  }
  func.func @transform_1(%arg0: i32, %arg1: i32) -> (i32, i32) {
    %c0_i32 = arith.constant 0 : i32
    %c0_i32_0 = arith.constant 0 : i32
    %c0_i32_1 = arith.constant 0 : i32
    return %c0_i32, %c0_i32_0 : i32, i32
  }
  func.func @transform_2(%arg0: i32, %arg1: i32) -> (i32, i32) {
    %c0_i32 = arith.constant 0 : i32
    %c0_i32_0 = arith.constant 0 : i32
    return %arg0, %c0_i32 : i32, i32
  }
  func.func @transform_3(%arg0: i32, %arg1: i32) -> (i32, i32, i32) {
    %c0_i32 = arith.constant 0 : i32
    %c0_i32_0 = arith.constant 0 : i32
    return %arg1, %arg0, %c0_i32 : i32, i32, i32
  }
}

</mosaic_0001>

<bundles_post_ra>
// kernel: tpu_custom_call.1
= control target key start
LH: loop header
LB: loop body
LE: loop exit
PB: predicated region body
PF: predicated region fallthrough
CT: control target
= control target key end

     0   :  { %8 = vsyncpa [#allocation4], 0  ;;  %s895_s0 = inlined_call_operand.vmem [shape: bf16[2,32,3], index: 0, kind: input, shape index: {}]   ;;  %s896_s1 = inlined_call_operand.vmem [shape: bf16[3,32], index: 1, kind: input, shape index: {}]   ;;  %s897_s2 = inlined_call_operand.vmem [shape: bf16[5000,32], index: 2, kind: input, shape index: {}]   ;;  %s898_s3 = inlined_call_operand.hbm [shape: bf16[2,32,32], index: 3, kind: output, shape index: {}]  }
   0x1   :  { %10 = vsyncpa [#allocation4 + $0x1], 0  ;;  %s774_s12 = smov 0   ;;  %s776_s13 = smov 0  }
   0x2   :  { %s778_s14 = smov 0   ;;  %s780_s15 = smov 0  }
   0x3   :  { %s782_s16 = smov 0   ;;  %s784_s17 = smov 0  }
   0x4 LB: > { %s547_s18 = sadd.s32 4294967295, %s742_s17   ;;  %s548_s19 = sadd.s32 4294967294, %s742_s17   ;;  %s742_s17 = sphi %s784_s17, %s16_s17   ;;  %s738_s16 = sphi %s782_s16, %s905_s16   ;;  %s734_s15 = sphi %s780_s15, %s904_s15   ;;  %s730_s14 = sphi %s778_s14, %s903_s14   ;;  %s726_s13 = sphi %s776_s13, %s902_s13   ;;  %s722_s12 = sphi %s774_s12, %s901_s12  }
   0x5   : > { %s28_s20 = sadd.s32 1, %s738_s16  ;;  %s37_s21 = sadd.s32 1, %s730_s14 }
   0x6   : > { %p30_p0 = scmp.ge.s32.totalorder %s28_s20, 2  ;;  %p44_p1 = scmp.ne.s32.totalorder %s730_s14, %s726_s13 }
   0x7   : > { %p45_p2 = scmp.eq.s32.totalorder %s742_s17, 0  ;;  %p123_p3 = scmp.eq.s32.totalorder %s547_s18, 1 }
   0x8   : > { %s907_s20 = smov (%p30_p0, %s28_s20), 0  ;;  %p128_p6 = scmp.ne.s32.totalorder %s726_s13, %s722_s12 }
   0x9   : > { %p46_p4 = por %p45_p2, %p44_p1  ;;  %p813_p5 = por %p123_p3, %p44_p1 }
   0xa   : > { %s33_s23 = ssub.s32 %s738_s16, %s907_s20  ;;  %p129_p8 = scmp.eq.s32.totalorder %s548_s19, 1 }
   0xb   : > { %p35_p7 = scmp.eq.s32.totalorder %s33_s23, 0  ;;  %p550_p10 = scmp.ge.s32.totalorder %s742_s17, 2 }
   0xc   : > { %p824_p9 = por %p129_p8, %p128_p6 }
   0xd   : > { %s822_s24 = scalar_select %p35_p7, %s730_s14, %s37_s21  }
   0xe   : > { %148 = sbr.rel (%p550_p10) target bundleno = 24 (0x18), region = 20 }
  0x13   : > { %151 = sbr.rel (!%p46_p4) target bundleno = 24 (0x18), region = 24  ;;  %s153_s26 = sand.u32 (%p46_p4), 1, %s730_s14  }
  0x14   : > { %s568_s27 = sshll.u32 (%p46_p4), %s738_s16, 3  ;;  %s551_s28 = sshll.u32 (%p46_p4), %s153_s26, 4 }
  0x15   : > { %s161_s4 = scalar_lea.vmem (%p46_p4), %s895_s0, %s568_s27  ;;  %s155_s5 = scalar_lea.vmem (%p46_p4), [#allocation2], %s551_s28 }
  0x16   : > { %v178_v0 = vld [vmem:[%s161_s4] sm:$0xff] (%p46_p4)   ;;  %v182_v1 = vld [vmem:[%s161_s4 + $0x10] sm:$0xff] (%p46_p4)  }
  0x17   : > { %179 = vst [vmem:[%s155_s5] sm:$0xff] (%p46_p4), %v178_v0   ;;  %183 = vst [vmem:[%s155_s5 + $0x8] sm:$0xff] (%p46_p4), %v182_v1  }
  0x18 PF: > { %p554_p11 = scmp.ge.s32.totalorder %s742_s17, 1  ;;  %p233_p12 = scmp.lt.s32.totalorder %s742_s17, 3 }
  0x1a   : > { %p234_p13 = pnand %p554_p11, %p233_p12 }
  0x1b   : > { %s240_s6 = sand.u32 (!%p234_p13), 1, %s726_s13   ;;  %s557_s9 = sshll.u32 (!%p234_p13), %s734_s15, 1 }
  0x1c   : > { %237 = sbr.rel (%p234_p13) target bundleno = 190 (0xbe), region = 69  ;;  %s841_s7 = sshll.u32 (!%p234_p13), %s240_s6, 4 }
  0x1d   : > { %s242_s8 = scalar_lea.vmem (!%p234_p13), [#allocation2], %s841_s7  ;;  %p279_p0 = scmp.lt.s32.totalorder (!%p234_p13), %s557_s9, 624 }
  0x1e   : > { %s271_s26 = scalar_lea.vmem (!%p234_p13), [#allocation3], %s841_s7  ;;  %s414_s27 = scalar_lea.sflag (!%p234_p13), [#allocation4], %s240_s6 }
  0x21   : > { %v744_v2 = vmov 1   ;;  %v745_v3 = vmov 0   ;;  %v575_v4 = vld [vmem:[%s242_s8] sm:$0xff]   ;;  %v586_v5 = vld [vmem:[%s242_s8 + $0x8] sm:$0xff]   ;;  %v746_v12 = vmov 2   ;;  %v324_v13 = vlaneseq  ;;  %s909_s9 = smov (!%p279_p0, %s557_s9), 624 }
  0x22   : > { %669 = vset.pattern.permute.xlu1 %v744_v2  ;;  %658 = vset.pattern.permute.xlu0 %v745_v3  ;;  %v576_v6 = vunpack.c.l.bf16 %v575_v4  ;;  %v577_v7 = vunpack.c.h.bf16 %v575_v4  ;;  %v580_v8 = vunpack.c.l.bf16 %v586_v5  ;;  %v581_v9 = vunpack.c.h.bf16 %v586_v5  ;;  %v298_v15 = vld [vmem:[%s896_s1] sm:$0x3]  ;;  %s558_s18 = sshll.u32 %s909_s9, 2 }
  0x23   : > { %v325_v14 = vshrl.u32 %v324_v13, 7  ;;  %v299_v16 = vunpack.c.l.bf16 %v298_v15  ;;  %s282_s23 = scalar_lea.vmem %s897_s2, %s558_s18  ;;  %vm408_vm0 = vcmask 257024  }
  0x24   : > { %v670_v10 = vpack.i.bf16 %v577_v7, %v576_v6  ;;  %v675_v11 = vpack.i.bf16 %v581_v9, %v580_v8  ;;  %v583_v20 = vld [vmem:[%s282_s23] sm:$0xff]  }
  0x25   : > { %v326_v17 = vsub.s32 0, %v325_v14  ;;  %v354_v24 = vsub.s32 1, %v325_v14  ;;  %v584_v25 = vunpack.c.l.bf16 %v583_v20  ;;  %v585_v26 = vunpack.c.h.bf16 %v583_v20 }
  0x26   : > { %671 = vperm.xlu1 %669, %v670_v10   ;;  %660 = vperm.xlu0 %658, %v670_v10   ;;  %v382_v29 = vsub.s32 2, %v325_v14 }
  0x27   : > { %v327_v21 = vrot.slane %v299_v16, %v326_v17  ;;  %v355_v36 = vrot.slane %v299_v16, %v354_v24 }
  0x28   : > { %v383_v41 = vrot.slane %v299_v16, %v382_v29 }
  0x2a   : > { %676 = vperm.xlu1 %669, %v675_v11   ;;  %665 = vperm.xlu0 %658, %v675_v11  }
  0x2e   : > { %686 = vset.pattern.permute.xlu1 %v746_v12  ;;  %680 = vset.pattern.permute.xlu0 %v746_v12 }
  0x2f   : > { %688 = vperm.xlu1 %686, %v675_v11   ;;  %682 = vperm.xlu0 %680, %v670_v10  }
  0xa1   : > { %v672_v18 = vpop.permute.xlu1 %671  ;;  %v661_v19 = vpop.permute.xlu0 %660 }
  0xa2   : > { %v663_v22 = vunpack.i.h.bf16 %v661_v19  ;;  %v662_v23 = vunpack.i.l.bf16 %v661_v19  ;;  %v674_v37 = vunpack.i.h.bf16 %v672_v18  ;;  %v673_v38 = vunpack.i.l.bf16 %v672_v18 }
  0xa4   : > { %v329_v30 = vmul.f32 %v663_v22, %v327_v21  ;;  %v328_v31 = vmul.f32 %v662_v23, %v327_v21  ;;  %v357_v52 = vmul.f32 %v674_v37, %v355_v36  ;;  %v356_v53 = vmul.f32 %v673_v38, %v355_v36 }
  0xa5   : > { %v677_v27 = vpop.permute.xlu1 %676  ;;  %v666_v28 = vpop.permute.xlu0 %665 }
  0xa6   : > { %v679_v32 = vunpack.i.h.bf16 %v677_v27  ;;  %v678_v33 = vunpack.i.l.bf16 %v677_v27  ;;  %v668_v34 = vunpack.i.h.bf16 %v666_v28  ;;  %v667_v35 = vunpack.i.l.bf16 %v666_v28 }
  0xa7   : > { %v333_v42 = vadd.f32 %v585_v26, %v329_v30  ;;  %v332_v43 = vadd.f32 %v584_v25, %v328_v31 }
  0xa8   : > { %v331_v39 = vmul.f32 %v668_v34, %v327_v21  ;;  %v330_v40 = vmul.f32 %v667_v35, %v327_v21  ;;  %v359_v44 = vmul.f32 %v679_v32, %v355_v36  ;;  %v358_v45 = vmul.f32 %v678_v33, %v355_v36 }
  0xa9   : > { %v360_v61 = vadd.f32 %v356_v53, %v332_v43  ;;  %v361_v62 = vadd.f32 %v357_v52, %v333_v42 }
  0xaa   : > { %v689_v46 = vpop.permute.xlu1 %688  ;;  %v683_v47 = vpop.permute.xlu0 %682  ;;  %v335_v48 = vadd.f32 %v585_v26, %v331_v39  ;;  %v334_v49 = vadd.f32 %v584_v25, %v330_v40 }
  0xab   : > { %v691_v50 = vunpack.i.h.bf16 %v689_v46  ;;  %v690_v51 = vunpack.i.l.bf16 %v689_v46  ;;  %v685_v54 = vunpack.i.h.bf16 %v683_v47  ;;  %v684_v55 = vunpack.i.l.bf16 %v683_v47 }
  0xac   : > { %v362_v57 = vadd.f32 %v358_v45, %v334_v49  ;;  %v363_v58 = vadd.f32 %v359_v44, %v335_v48 }
  0xad   : > { %v387_v56 = vmul.f32 %v691_v50, %v383_v41  ;;  %v386_v59 = vmul.f32 %v690_v51, %v383_v41  ;;  %v385_v60 = vmul.f32 %v685_v54, %v383_v41  ;;  %v384_v63 = vmul.f32 %v684_v55, %v383_v41 }
  0xaf   : > { %v390_v0 = vadd.f32 %v386_v59, %v362_v57  ;;  %v391_v1 = vadd.f32 %v387_v56, %v363_v58  ;;  %v388_v2 = vadd.f32 %v384_v63, %v360_v61  ;;  %v389_v3 = vadd.f32 %v385_v60, %v361_v62 }
  0xb1   : > { %v571_v4 = vpack.c.bf16 %v390_v0, %v390_v0  ;;  %v572_v5 = vpack.c.bf16 %v391_v1, %v391_v1  ;;  %v569_v6 = vpack.c.bf16 %v388_v2, %v388_v2  ;;  %v570_v7 = vpack.c.bf16 %v389_v3, %v389_v3 }
  0xb3   : > { %411 = vst.msk [vmem:[%s271_s26 + $0x8] sm:$0xf] %vm408_vm0, %v571_v4  ;;  %412 = vst.msk [vmem:[%s271_s26 + $0xc] sm:$0xf] %vm408_vm0, %v572_v5 }
  0xb4   : > { %409 = vst.msk [vmem:[%s271_s26] sm:$0xf] %vm408_vm0, %v569_v6  ;;  %410 = vst.msk [vmem:[%s271_s26 + $0x4] sm:$0xf] %vm408_vm0, %v570_v7 }
  0xb5   : > { %s573_s28 = sshll.u32 %s734_s15, 7  ;;  %s440_s29 = sshll.u32 %s271_s26, 4  ;;  %s441_s29 = int_to_ptr.vmem [resolvable:$true] %s440_s29 }
  0xb6   : > { %s429_s5 = scalar_lea.hbm %s898_s3, %s573_s28  ;;  %s747_s7 = smov 128  }
  0xb7   : > { %587 = sst [smem:[#allocation6]] (%p813_p5), %s747_s7  ;;  %s748_s8 = smov 256  }
  0xb8   : > { %588 = sst [smem:[#allocation6 + $0x1]] (%p813_p5), %s748_s8  ;;  %s749_s6 = smov 2  }
  0xb9   : > { %589 = sst [smem:[#allocation6 + $0x2]] (%p813_p5), %s749_s6  ;;  %s750_s9 = smov 64  }
  0xba   : > { %590 = sst [smem:[#allocation6 + $0x3]] (%p813_p5), %s750_s9  ;;  %s751_s15 = smov 4  }
  0xbb   : > { %591 = sst [smem:[#allocation6 + $0x4]] (%p813_p5), %s750_s9  ;;  %s752_s10 = smov 131072  }
  0xbc   : > { %592 = sst [smem:[#allocation6 + $0x5]] (%p813_p5), %s751_s15  ;;  %s753_s11 = smov 0  }
  0xbd   : > { %593 = dma.general (%p813_p5), %s441_s29, 256, %s429_s5, %s414_s27, %s752_s10, [#allocation6], %s753_s11, 0  }
  0xbe PF: > { %s468_s18 = sand.u32 1, %s722_s12   ;;  %p596_p1 = pnand %p550_p10, %p824_p9 }
  0xbf   : > { %s469_s19 = scalar_lea.sflag [#allocation4], %s468_s18 }
  0xc0   : > { %p597_p2 = pneg %p596_p1 }
  0xc2   : > { %717 = dma.done.wait (%p597_p2), %s469_s19, 256  }
  0xc3   : > { %719 = vsyncadd (%p597_p2), %s469_s19, 4294967040  ;;  %s16_s17 = sadd.s32 1, %s742_s17   ;;  %s901_s12 = smov %s726_s13 }
  0xc4   : > { %p13_p3 = scmp.ge.s32.totalorder %s16_s17, 4   ;;  %s902_s13 = smov %s730_s14 }
  0xc5   : > { %s903_s14 = smov %s822_s24  ;;  %s904_s15 = smov %s738_s16 }
  0xc6   : > { %s905_s16 = smov %s907_s20  ;;  %15 = sbr.rel (!%p13_p3) target bundleno = 4 (0x4), region = 121 }
  0xcb   :  { %474 = vsyncpa [#allocation4], 1 }
  0xcc   :  { %476 = vsyncpa [#allocation4 + $0x1], 1 }

</bundles_post_ra>
